<compile_context>
chip_gen: v7x
topology: tpu7x:2x2x1
jax: 0.10.0
libtpu: 0.0.40
codegen_flags: <defaults>
</compile_context>

<pallas_src>
import functools

import jax
import jax.numpy as jnp
from jax.experimental import pallas as pl
from jax.experimental.pallas import tpu as pltpu


def rotary_kernel(x_ref, cos_ref, sin_ref, o_ref, cos_rows_ref, sin_rows_ref, *, heads):
    """Apply rotary embedding to one (block_rows, D) tile of the flattened input.

    x_ref:        (block_rows, D)  activations, block_rows = block_t * heads
    cos_ref:      (block_t, D)     cat(cos,  cos)  for these T positions (f32)
    sin_ref:      (block_t, D)     cat(sin, -sin)  for these T positions (f32)
    o_ref:        (block_rows, D)  output, same dtype as x
    cos_rows_ref: (block_rows, D)  f32 scratch: table expanded to per-row form
    sin_rows_ref: (block_rows, D)  f32 scratch
    """
    # Batch is the innermost grid axis, so the table tiles stay resident across
    # b for a fixed t-block. Expand them to per-row form only on the first
    # batch step of each t-block and reuse the scratch afterwards.
    @pl.when(pl.program_id(1) == 0)
    def _():
        bt, d = cos_ref.shape
        c = cos_ref[...]
        s = sin_ref[...]
        # Repeat each position's row `heads` times: (bt, D) -> (bt*heads, D).
        cos_rows_ref[...] = jnp.broadcast_to(c[:, None, :], (bt, heads, d)).reshape(bt * heads, d)
        sin_rows_ref[...] = jnp.broadcast_to(s[:, None, :], (bt, heads, d)).reshape(bt * heads, d)

    x = x_ref[...].astype(jnp.float32)            # f32 compute, like torch
    half = x.shape[-1] // 2
    x_rot = pltpu.roll(x, shift=half, axis=1)     # cat(x2, x1) along lanes (XLU slot)
    o_ref[...] = (x * cos_rows_ref[...] + x_rot * sin_rows_ref[...]).astype(o_ref.dtype)


def make_rotary_tables(dim, max_seq_len=65536):
    """Replicates Rotary.__init__ and additionally builds the fused tables once.

    Returns:
      cos, sin:             (max_seq_len, dim // 2)   -- faithful torch buffers
      cos_cat, sin_signed:  (max_seq_len, dim)        -- kernel-ready tables
    """
    quarter = dim // 4
    angular_freq = (1.0 / 1024.0) ** jnp.linspace(0.0, 1.0, quarter, dtype=jnp.float32)
    angular_freq = jnp.concatenate([angular_freq, jnp.zeros((quarter,), jnp.float32)])
    t = jnp.arange(max_seq_len, dtype=jnp.float32)
    theta = t[:, None] * angular_freq[None, :]    # einsum('i,j->ij', t, angular_freq)
    cos, sin = jnp.cos(theta), jnp.sin(theta)
    cos_cat = jnp.concatenate([cos, cos], axis=-1)
    sin_signed = jnp.concatenate([sin, -sin], axis=-1)
    return cos, sin, cos_cat, sin_signed


def _pick_block_t(T, H, x_itemsize, target_rows=2048):
    """Pick block_t (positions per tile) so that:
       * block_t is a multiple of 8 (table tile second-minor constraint),
       * block_t * H (flattened row tile) is a multiple of the sublane granule
         for x's dtype (8 for f32, 16 for bf16/fp16),
       * block_t * H is roughly target_rows (amortize per-step overhead),
       * never falls back to full T for huge sequences (grid uses pl.cdiv, so a
         ragged last tile is fine for this purely elementwise kernel).
    """
    sub = 8 if x_itemsize >= 4 else (16 if x_itemsize == 2 else 32)
    bt = max(8, (target_rows // max(H, 1)) // 8 * 8)
    bt = min(bt, pl.cdiv(T, 8) * 8)               # never more than (padded) T
    while (bt * H) % sub != 0:
        bt += 8
    return bt


def rotary_pallas(x, cos_cat, sin_signed, *, block_t=None, target_rows=2048):
    """x: (B, T, H, D); cos_cat/sin_signed: (max_seq_len, D) -> (B, T, H, D)."""
    B, T, H, D = x.shape
    assert D % 2 == 0 and cos_cat.shape[-1] == D and sin_signed.shape == cos_cat.shape
    assert cos_cat.shape[0] >= T, "sequence longer than precomputed rotary table"

    if block_t is None:
        block_t = _pick_block_t(T, H, x.dtype.itemsize, target_rows=target_rows)
    block_rows = block_t * H
    grid_t = pl.cdiv(T, block_t)
    grid = (grid_t, B)                            # batch innermost -> table tiles reused

    rows = T * H
    x_flat = x.reshape(B, rows, D)                # free view: (T, H, D) is contiguous

    # VMEM budget: double-buffered in/out tiles + table tiles + 2 f32 scratches
    # + headroom for elementwise f32 temporaries. Keep well under v7x's 64 MiB.
    f32_tile = block_rows * D * 4
    io_tile = block_rows * D * x.dtype.itemsize
    tbl_tile = block_t * D * 4
    vmem_need = 2 * 2 * io_tile + 2 * 2 * tbl_tile + 2 * f32_tile + 6 * f32_tile
    vmem_limit = int(min(64 * 1024 * 1024, max(32 * 1024 * 1024, vmem_need * 5 // 4)))

    x_bytes = x.size * x.dtype.itemsize
    cost = pl.CostEstimate(
        flops=3 * x.size,                          # 2 mul + 1 add per output element
        transcendentals=0,
        bytes_accessed=2 * x_bytes + 2 * T * D * 4,  # tables are read once total
    )

    kernel = functools.partial(rotary_kernel, heads=H)
    out_flat = pl.pallas_call(
        kernel,
        out_shape=jax.ShapeDtypeStruct((B, rows, D), x.dtype),
        grid_spec=pltpu.PrefetchScalarGridSpec(
            num_scalar_prefetch=0,
            grid=grid,
            in_specs=[
                # x tile: (block_rows, D), lane-dense, sublane-aligned
                pl.BlockSpec((None, block_rows, D), lambda t, b: (b, t, 0)),
                # table tiles: block index independent of b -> fetched once per t
                pl.BlockSpec((block_t, D), lambda t, b: (t, 0)),
                pl.BlockSpec((block_t, D), lambda t, b: (t, 0)),
            ],
            out_specs=pl.BlockSpec((None, block_rows, D), lambda t, b: (b, t, 0)),
            scratch_shapes=[
                pltpu.VMEM((block_rows, D), jnp.float32),   # expanded cos rows
                pltpu.VMEM((block_rows, D), jnp.float32),   # expanded sin rows
            ],
        ),
        compiler_params=pltpu.CompilerParams(
            # t-axis shardable across TensorCores; b-axis must stay sequential
            # because the expanded-table scratch is filled at b == 0.
            dimension_semantics=("parallel", "arbitrary"),
            vmem_limit_bytes=vmem_limit,
        ),
        cost_estimate=cost,
    )(x_flat, cos_cat, sin_signed)
    return out_flat.reshape(B, T, H, D)


def rotary_reference(x, cos, sin):
    """Plain-JAX mirror of the PyTorch forward (uses the raw cos/sin buffers)."""
    B, T, H, D = x.shape
    half = D // 2
    c = cos[:T][None, :, None, :]
    s = sin[:T][None, :, None, :]
    xf = x.astype(jnp.float32)
    x1, x2 = xf[..., :half], xf[..., half:]
    y1 = x1 * c + x2 * s
    y2 = -x1 * s + x2 * c
    return jnp.concatenate([y1, y2], axis=-1).astype(x.dtype)


if __name__ == "__main__":
    # Small config consistent with the module: head dim D multiple of 4 (128 so
    # the lane axis is dense), T <= max_seq_len.
    B, T, H, D = 2, 16, 4, 128
    max_seq_len = 2048

    cos, sin, cos_cat, sin_signed = make_rotary_tables(D, max_seq_len)

    key = jax.random.PRNGKey(0)
    x = jax.random.normal(key, (B, T, H, D), dtype=jnp.float32)

    # f32 path: should match the reference to tight tolerance.
    out = rotary_pallas(x, cos_cat, sin_signed)
    jax.block_until_ready(out)
    ref = rotary_reference(x, cos, sin)
    assert out.shape == ref.shape and out.dtype == ref.dtype
    assert jnp.allclose(out, ref, atol=1e-5, rtol=1e-5), "f32 mismatch vs reference"

    # bf16 I/O path (f32 compute inside, cast back like torch .type_as).
    x_bf16 = x.astype(jnp.bfloat16)
    out_bf16 = rotary_pallas(x_bf16, cos_cat, sin_signed)
    jax.block_until_ready(out_bf16)
    ref_bf16 = rotary_reference(x_bf16, cos, sin)
    assert out_bf16.dtype == jnp.bfloat16
    assert jnp.allclose(out_bf16.astype(jnp.float32), ref_bf16.astype(jnp.float32),
                        atol=2e-2, rtol=2e-2), "bf16 mismatch vs reference"

    print("KERNEL_OK")
</pallas_src>

<mosaic_0001>
module attributes {stable_mosaic.version = 11 : i64} {
  func.func @rotary_kernel(%arg0: i32, %arg1: i32, %arg2: memref<1x64x128xf32, #tpu.memory_space<vmem>>, %arg3: memref<16x128xf32, #tpu.memory_space<vmem>>, %arg4: memref<16x128xf32, #tpu.memory_space<vmem>>, %arg5: memref<1x64x128xf32, #tpu.memory_space<vmem>>, %arg6: memref<64x128xf32, #tpu.memory_space<vmem>>, %arg7: memref<64x128xf32, #tpu.memory_space<vmem>>) attributes {dimension_semantics = [#tpu.dimension_semantics<parallel>, #tpu.dimension_semantics<arbitrary>], iteration_bounds = array<i64: 1, 2>, scalar_prefetch = 0 : i64, scratch_operands = 2 : i64, tpu.core_type = #tpu.core_type<tc>, window_params = [{transform_indices = @transform_0, window_bounds = array<i64: 1, 64, 128>}, {transform_indices = @transform_1, window_bounds = array<i64: 16, 128>}, {transform_indices = @transform_2, window_bounds = array<i64: 16, 128>}, {transform_indices = @transform_3, window_bounds = array<i64: 1, 64, 128>}]} {
    %c0_i32 = arith.constant 0 : i32
    %0 = arith.cmpi eq, %arg1, %c0_i32 : i32
    %1 = arith.extui %0 : i1 to i32
    %c0_i32_0 = arith.constant 0 : i32
    %2 = arith.cmpi ne, %1, %c0_i32_0 : i32
    scf.if %2 {
      %c0_10 = arith.constant 0 : index
      %c0_11 = arith.constant 0 : index
      %14 = vector.load %arg3[%c0_10, %c0_11] : memref<16x128xf32, #tpu.memory_space<vmem>>, vector<16x128xf32>
      %c0_12 = arith.constant 0 : index
      %c0_13 = arith.constant 0 : index
      %15 = vector.load %arg4[%c0_12, %c0_13] : memref<16x128xf32, #tpu.memory_space<vmem>>, vector<16x128xf32>
      %16 = vector.shape_cast %14 : vector<16x128xf32> to vector<16x1x128xf32>
      %17 = vector.shape_cast %16 : vector<16x1x128xf32> to vector<16x1x128xf32>
      %18 = vector.broadcast %17 : vector<16x1x128xf32> to vector<16x4x128xf32>
      %19 = vector.shape_cast %18 : vector<16x4x128xf32> to vector<64x128xf32>
      %c0_14 = arith.constant 0 : index
      %c0_15 = arith.constant 0 : index
      %20 = vector.load %arg6[%c0_14, %c0_15] : memref<64x128xf32, #tpu.memory_space<vmem>>, vector<64x128xf32>
      tpu.vector_store %arg6[%c0_14, %c0_15], %19 {strides = array<i32>} : memref<64x128xf32, #tpu.memory_space<vmem>>, vector<64x128xf32>,
      %21 = vector.shape_cast %15 : vector<16x128xf32> to vector<16x1x128xf32>
      %22 = vector.shape_cast %21 : vector<16x1x128xf32> to vector<16x1x128xf32>
      %23 = vector.broadcast %22 : vector<16x1x128xf32> to vector<16x4x128xf32>
      %24 = vector.shape_cast %23 : vector<16x4x128xf32> to vector<64x128xf32>
      %c0_16 = arith.constant 0 : index
      %c0_17 = arith.constant 0 : index
      %25 = vector.load %arg7[%c0_16, %c0_17] : memref<64x128xf32, #tpu.memory_space<vmem>>, vector<64x128xf32>
      tpu.vector_store %arg7[%c0_16, %c0_17], %24 {strides = array<i32>} : memref<64x128xf32, #tpu.memory_space<vmem>>, vector<64x128xf32>,
    } else {
    }
    %c0 = arith.constant 0 : index
    %c0_1 = arith.constant 0 : index
    %c0_2 = arith.constant 0 : index
    %3 = vector.load %arg2[%c0, %c0_1, %c0_2] : memref<1x64x128xf32, #tpu.memory_space<vmem>>, vector<1x64x128xf32>
    %4 = vector.shape_cast %3 : vector<1x64x128xf32> to vector<64x128xf32>
    %c64_i32 = arith.constant 64 : i32
    %5 = tpu.dynamic_rotate %4 by %c64_i32 dim 1 : vector<64x128xf32>, i32 -> vector<64x128xf32>
    %c0_3 = arith.constant 0 : index
    %c0_4 = arith.constant 0 : index
    %6 = vector.load %arg6[%c0_3, %c0_4] : memref<64x128xf32, #tpu.memory_space<vmem>>, vector<64x128xf32>
    %7 = arith.mulf %4, %6 : vector<64x128xf32>
    %c0_5 = arith.constant 0 : index
    %c0_6 = arith.constant 0 : index
    %8 = vector.load %arg7[%c0_5, %c0_6] : memref<64x128xf32, #tpu.memory_space<vmem>>, vector<64x128xf32>
    %9 = arith.mulf %5, %8 : vector<64x128xf32>
    %10 = arith.addf %7, %9 : vector<64x128xf32>
    %c0_7 = arith.constant 0 : index
    %c0_8 = arith.constant 0 : index
    %c0_9 = arith.constant 0 : index
    %11 = vector.load %arg5[%c0_7, %c0_8, %c0_9] : memref<1x64x128xf32, #tpu.memory_space<vmem>>, vector<1x64x128xf32>
    %12 = vector.shape_cast %11 : vector<1x64x128xf32> to vector<64x128xf32>
    %13 = vector.shape_cast %10 : vector<64x128xf32> to vector<1x64x128xf32>
    tpu.vector_store %arg5[%c0_7, %c0_8, %c0_9], %13 {strides = array<i32>} : memref<1x64x128xf32, #tpu.memory_space<vmem>>, vector<1x64x128xf32>,
    return
  }
  func.func @transform_0(%arg0: i32, %arg1: i32) -> (i32, i32, i32) {
    %c0_i32 = arith.constant 0 : i32
    %c0_i32_0 = arith.constant 0 : i32
    return %arg1, %arg0, %c0_i32 : i32, i32, i32
  }
  func.func @transform_1(%arg0: i32, %arg1: i32) -> (i32, i32) {
    %c0_i32 = arith.constant 0 : i32
    %c0_i32_0 = arith.constant 0 : i32
    return %arg0, %c0_i32 : i32, i32
  }
  func.func @transform_2(%arg0: i32, %arg1: i32) -> (i32, i32) {
    %c0_i32 = arith.constant 0 : i32
    %c0_i32_0 = arith.constant 0 : i32
    return %arg0, %c0_i32 : i32, i32
  }
  func.func @transform_3(%arg0: i32, %arg1: i32) -> (i32, i32, i32) {
    %c0_i32 = arith.constant 0 : i32
    %c0_i32_0 = arith.constant 0 : i32
    return %arg1, %arg0, %c0_i32 : i32, i32, i32
  }
}

</mosaic_0001>

<bundles_post_ra>
// kernel: tpu_custom_call.1
= control target key start
LH: loop header
LB: loop body
LE: loop exit
PB: predicated region body
PF: predicated region fallthrough
CT: control target
= control target key end

     0   :  { %8 = vsyncpa [#allocation5], 0  ;;  %s1519_s0 = inlined_call_operand.hbm [shape: f32[2,64,128], index: 0, kind: input, shape index: {}]   ;;  %s1520_s1 = inlined_call_operand.hbm [shape: f32[2048,128], index: 1, kind: input, shape index: {}]   ;;  %s1521_s2 = inlined_call_operand.hbm [shape: f32[2048,128], index: 2, kind: input, shape index: {}]   ;;  %s1522_s3 = inlined_call_operand.hbm [shape: f32[2,64,128], index: 3, kind: output, shape index: {}]  }
   0x1   :  { %10 = vsyncpa [#allocation5 + $0x1], 0 }
   0x2   :  { %11 = vsyncpa [#allocation8], 0 }
   0x3   :  { %12 = vsyncpa [#allocation6], 0 }
   0x4   :  { %14 = vsyncpa [#allocation6 + $0x1], 0  ;;  %s1157_s12 = smov 0   ;;  %s1159_s13 = smov 0  }
   0x5   :  { %s1161_s14 = smov 0   ;;  %s1163_s15 = smov 0  }
   0x6   :  { %s1165_s16 = smov 0   ;;  %s1167_s17 = smov 0  }
   0x7 LB: > { %s838_s18 = sadd.s32 4294967295, %s1125_s17   ;;  %s839_s19 = sadd.s32 4294967294, %s1125_s17   ;;  %s1125_s17 = sphi %s1167_s17, %s20_s17   ;;  %s1121_s16 = sphi %s1165_s16, %s1545_s16   ;;  %s1117_s15 = sphi %s1163_s15, %s1544_s15   ;;  %s1113_s14 = sphi %s1161_s14, %s1543_s14   ;;  %s1109_s13 = sphi %s1159_s13, %s1542_s13   ;;  %s1105_s12 = sphi %s1157_s12, %s1541_s12  }
   0x8   : > { %p54_p0 = scmp.ne.s32.totalorder %s1109_s13, %s1105_s12  ;;  %p1191_p1 = scmp.eq.s32.totalorder %s838_s18, 0 }
   0x9   : > { %p1195_p2 = scmp.eq.s32.totalorder %s838_s18, 1  ;;  %p138_p3 = scmp.eq.s32.totalorder %s839_s19, 1 }
   0xa   : > { %s1527_s20 = scalar_select %p1191_p1, 1, 0 }
   0xb   : > { %s1528_s21 = scalar_select %p1195_p2, 1, 0 }
   0xc   : > { %p1201_p4 = por %p1191_p1, %p54_p0  ;;  %p840_p5 = scmp.ge.s32.totalorder %s1125_s17, 1 }
   0xd   : > { %p1206_p6 = por %p138_p3, %p54_p0  ;;  %p145_p7 = scmp.lt.s32.totalorder %s1125_s17, 3 }
   0xe   : > { %s1529_s22 = scalar_select %p1201_p4, 1, 0 }
   0xf   : > { %s1530_s23 = scalar_select %p1206_p6, 1, 0 }
  0x10   : > { %p1211_p8 = pnand %p840_p5, %p145_p7  ;;  %s1127_s25 = smov [#allocation7]  }
  0x11   : > { %s160_s26 = sshll.u32 %s1127_s25, 4  ;;  %s1128_s28 = smov [#allocation9]   ;;  %s1215_s26 = int_to_ptr.vmem [resolvable:$true] %s160_s26 }
  0x12   : > { %s1531_s24 = scalar_select %p1211_p8, 1, 0 }
  0x13   : > { %p872_p9 = pneg %p1211_p8  ;;  %s176_s29 = sshll.u32 %s1128_s28, 4  ;;  %s1226_s29 = int_to_ptr.vmem [resolvable:$true] %s176_s29 }
  0x14   : > { %s953_s5 = scalar_lea.hbm %s1520_s1, 256  ;;  %s958_s10 = scalar_lea.hbm %s1520_s1, 32768 }
  0x15   : > { %p1222_p11 = pnand %p872_p9, %p1191_p1  ;;  %p954_p12 = scmp.ne.s32.totalorder %s1520_s1, %s953_s5 }
  0x16   : > { %p959_p5 = scmp.lt.u32.totalorder %s958_s10, %s953_s5  ;;  %p960_p7 = scmp.lt.u32.totalorder %s953_s5, %s1520_s1 }
  0x17   : > { %p955_p13 = pneg %p1222_p11 }
  0x18   : > { %p961_p9 = por %p960_p7, %p959_p5 }
  0x19   : > { %p956_p0 = pnand %p955_p13, %p954_p12 }
  0x1b   : > { %p957_p3 = pneg %p956_p0 }
  0x1d   : > { %p962_p10 = pnand %p961_p9, %p957_p3 }
  0x1f   : > { %965 = shalt.err (!%p962_p10)
}
  0x20   : > { %s966_s19 = scalar_lea.vmem %s1215_s26, 256  ;;  %p974_p1 = scmp.lt.s32.totalorder %s1215_s26, %s1215_s26 }
  0x21   : > { %p967_p6 = scmp.ne.s32.totalorder %s1215_s26, %s966_s19  ;;  %p975_p4 = scmp.lt.s32.totalorder %s966_s19, %s966_s19 }
  0x23   : > { %p969_p12 = pnand %p967_p6, %p955_p13  ;;  %p976_p8 = por %p975_p4, %p974_p1 }
  0x25   : > { %p970_p0 = pneg %p969_p12 }
  0x27   : > { %p977_p2 = pnand %p976_p8, %p970_p0 }
  0x29   : > { %980 = shalt.err (!%p977_p2)
}
  0x2a   : > { %s1129_s25 = smov 128   ;;  %s1130_s28 = smov 8  }
  0x2b   : > { %875 = dma.hbm_to_vmem [thread:$0]  (!%p1222_p11), %s1520_s1, 256, %s1215_s26, [#allocation8], %s1129_s25, %s1129_s25, %s1130_s28  }
  0x2c   : > { %s981_s7 = scalar_lea.hbm %s1521_s2, 256  ;;  %s986_s18 = scalar_lea.hbm %s1521_s2, 32768 }
  0x2d   : > { %p982_p1 = scmp.ne.s32.totalorder %s1521_s2, %s981_s7  ;;  %p987_p6 = scmp.lt.u32.totalorder %s986_s18, %s981_s7 }
  0x2e   : > { %p988_p8 = scmp.lt.u32.totalorder %s981_s7, %s1521_s2 }
  0x2f   : > { %p984_p2 = pnand %p982_p1, %p955_p13 }
  0x30   : > { %p989_p10 = por %p988_p8, %p987_p6 }
  0x31   : > { %p985_p4 = pneg %p984_p2 }
  0x33   : > { %p990_p3 = pnand %p989_p10, %p985_p4 }
  0x35   : > { %993 = shalt.err (!%p990_p3)
}
  0x36   : > { %s994_s26 = scalar_lea.vmem %s1226_s29, 256  ;;  %p1002_p12 = scmp.lt.s32.totalorder %s1226_s29, %s1226_s29 }
  0x37   : > { %p995_p5 = scmp.ne.s32.totalorder %s1226_s29, %s994_s26  ;;  %p1003_p0 = scmp.lt.s32.totalorder %s994_s26, %s994_s26 }
  0x39   : > { %p997_p7 = pnand %p995_p5, %p955_p13  ;;  %p1004_p1 = por %p1003_p0, %p1002_p12 }
  0x3b   : > { %p998_p9 = pneg %p997_p7 }
  0x3d   : > { %p1005_p2 = pnand %p1004_p1, %p998_p9 }
  0x3f   : > { %1008 = shalt.err (!%p1005_p2)
}
  0x40   : > { %878 = dma.hbm_to_vmem [thread:$0]  (!%p1222_p11), %s1521_s2, 256, %s1226_s29, [#allocation8], %s1129_s25, %s1129_s25, %s1130_s28  }
  0x41   : > { %s29_s27 = sadd.s32 1, %s1121_s16  ;;  %s41_s6 = sadd.s32 1, %s1113_s14 }
  0x42   : > { %p30_p13 = scmp.ge.s32.totalorder %s29_s27, 2  ;;  %p48_p4 = scmp.ne.s32.totalorder %s1113_s14, %s1109_s13 }
  0x43   : > { %p49_p6 = scmp.eq.s32.totalorder %s1125_s17, 0  ;;  %p889_p8 = scmp.lt.s32.totalorder %s1125_s17, 2 }
  0x44   : > { %s1547_s27 = smov (%p30_p13, %s29_s27), 0  ;;  %p1533_p3 = scmp.ne.s32.totalorder %s1528_s21, 0 }
  0x45   : > { %p50_p10 = por %p49_p6, %p48_p4  ;;  %s36_s8 = ssub.s32 %s1121_s16, %s1547_s27 }
  0x46   : > { %p1302_p5 = por %p1533_p3, %p48_p4  ;;  %s190_s9 = sand.u32 1, %s1113_s14  }
  0x47   : > { %p39_p7 = scmp.eq.s32.totalorder %s36_s8, 0  ;;  %s844_s29 = sshll.u32 %s190_s9, 6 }
  0x48   : > { %s858_s10 = sshll.u32 %s1121_s16, 10  ;;  %s194_s21 = scalar_lea.vmem [#allocation4], %s844_s29 }
  0x49   : > { %s1311_s11 = scalar_select %p39_p7, %s1113_s14, %s41_s6  }
  0x4a   : > { %s1316_s30 = scalar_lea.hbm %s1519_s0, %s858_s10  ;;  %s203_s26 = sshll.u32 %s194_s21, 4  ;;  %s1324_s26 = int_to_ptr.vmem [resolvable:$true] %s203_s26 }
  0x4b   : > { %p1320_p11 = pnand %p889_p8, %p50_p10  ;;  %s1326_s5 = scalar_lea.sflag [#allocation5], %s190_s9 }
  0x4c   : > { %s1009_s6 = scalar_lea.hbm %s1316_s30, 1024  ;;  %s1014_s10 = scalar_lea.hbm %s1519_s0, 2048 }
  0x4d   : > { %p1010_p9 = scmp.ne.s32.totalorder %s1316_s30, %s1009_s6  ;;  %p1011_p12 = pneg %p1320_p11 }
  0x4e   : > { %p1015_p2 = scmp.lt.u32.totalorder %s1316_s30, %s1519_s0  ;;  %p1016_p13 = scmp.lt.u32.totalorder %s1014_s10, %s1009_s6 }
  0x4f   : > { %p1012_p0 = pnand %p1011_p12, %p1010_p9  ;;  %p1018_p6 = scmp.lt.u32.totalorder %s1009_s6, %s1316_s30 }
  0x50   : > { %p1017_p4 = por %p1016_p13, %p1015_p2 }
  0x51   : > { %p1013_p1 = pneg %p1012_p0 }
  0x52   : > { %p1019_p8 = por %p1018_p6, %p1017_p4 }
  0x54   : > { %p1020_p10 = pnand %p1019_p8, %p1013_p1 }
  0x56   : > { %1023 = shalt.err (!%p1020_p10)
}
  0x57   : > { %s1024_s9 = scalar_lea.vmem %s1324_s26, 1024  ;;  %s1131_s21 = smov [#allocation4]  }
  0x58   : > { %p1025_p3 = scmp.ne.s32.totalorder %s1324_s26, %s1024_s9  ;;  %s1029_s8 = sshll.u32 %s1131_s21, 4  ;;  %s1030_s8 = int_to_ptr.vmem [resolvable:$false] %s1029_s8 }
  0x59   : > { %s1031_s29 = scalar_lea.vmem %s1030_s8, 2048  ;;  %p1032_p0 = scmp.lt.s32.totalorder %s1324_s26, %s1030_s8 }
  0x5a   : > { %p1027_p7 = pnand %p1025_p3, %p1011_p12  ;;  %p1033_p2 = scmp.lt.s32.totalorder %s1031_s29, %s1024_s9 }
  0x5c   : > { %p1028_p9 = pneg %p1027_p7  ;;  %p1034_p13 = por %p1033_p2, %p1032_p0 }
  0x5e   : > { %p1035_p4 = pnand %p1034_p13, %p1028_p9 }
  0x60   : > { %1038 = shalt.err (!%p1035_p4)
}
  0x61   : > { %882 = dma.hbm_to_vmem [thread:$0]  (!%p1320_p11), %s1316_s30, 1024, %s1324_s26, %s1326_s5, %s1129_s25, %s1129_s25, %s1130_s28  }
  0x62   : > { %p1536_p12 = scmp.ne.s32.totalorder %s1531_s24, 0 }
  0x63   : > { %s1360_s6 = sand.u32 (!%p1536_p12), 1, %s1109_s13   ;;  %p1537_p1 = scmp.ne.s32.totalorder (!%p1536_p12), %s1529_s22, 0 }
  0x64   : > { %215 = sbr.rel (%p1536_p12) target bundleno = 296 (0x128), region = 32  ;;  %s848_s10 = sshll.u32 (!%p1536_p12), %s1360_s6, 6 }
  0x65   : > { %s218_s18 = scalar_lea.sflag (!%p1536_p12), [#allocation5], %s1360_s6  ;;  %s1364_s19 = scalar_lea.vmem (!%p1536_p12), [#allocation4], %s848_s10 }
  0x6b   : > { %1092 = dma.done.wait (%p1537_p1), %s218_s18, 1024  }
  0x6c   : > { %1094 = vsyncadd (%p1537_p1), %s218_s18, 4294966272  ;;  %p1538_p11 = scmp.ne.s32.totalorder %s1527_s20, 0 }
  0x6e   : > { %1096 = dma.done.wait (%p1538_p11), [#allocation8], 512  }
  0x6f   : > { %1098 = vsyncadd (%p1538_p11), [#allocation8], 4294966784  ;;  %s1374_s24 = scalar_lea.vmem [#allocation10], %s848_s10  ;;  %p852_p6 = scmp.ne.s32.totalorder %s1117_s15, 0 }
  0x70   : > { %v260_v0 = vld [vmem:[#allocation7] sm:$0xff] (!%p852_p6)  ;;  %v270_v1 = vlaneseq (!%p852_p6)  ;;  %v261_v2 = vld [vmem:[#allocation7 + $0x8] sm:$0xff] (!%p852_p6)  ;;  %v1132_v3 = vmov (!%p852_p6), 1966171168   ;;  %v262_v5 = vld [vmem:[#allocation9] sm:$0xff] (!%p852_p6) }
  0x71   : > { %259 = sbr.rel (%p852_p6) target bundleno = 149 (0x95), region = 48  ;;  %v268_v4 = vunpack.c.l.s4 (!%p852_p6), %v1132_v3  ;;  %v263_v6 = vld [vmem:[#allocation9 + $0x8] sm:$0xff] (!%p852_p6)  ;;  %v266_v9 = vcombine.high (!%p852_p6), %v260_v0, %v260_v0  ;;  %v315_v10 = vcombine.high (!%p852_p6), %v261_v2, %v261_v2  ;;  %v454_v11 = vcombine.high (!%p852_p6), %v262_v5, %v262_v5 }
  0x72   : > { %v271_v7 = vshrl.u32 (!%p852_p6), %v270_v1, 7  ;;  %v503_v12 = vcombine.high (!%p852_p6), %v263_v6, %v263_v6 }
  0x73   : > { %v269_v8 = vunpack.c.0.s8 (!%p852_p6), %v268_v4 }
  0x74   : > { %v1379_v14 = vsub.s32 (!%p852_p6), 0, %v271_v7 }
  0x75   : > { %v1377_v13 = vsub.s32 (!%p852_p6), %v269_v8, %v271_v7 }
  0x77   : > { %v273_v15 = vrot.slane (!%p852_p6), %v260_v0, %v1377_v13  ;;  %v280_v16 = vrot.slane (!%p852_p6), %v266_v9, %v1377_v13  ;;  %v322_v17 = vrot.slane (!%p852_p6), %v261_v2, %v1377_v13  ;;  %v329_v18 = vrot.slane (!%p852_p6), %v315_v10, %v1377_v13 }
  0x78   : > { %v461_v19 = vrot.slane %v262_v5, %v1377_v13  ;;  %v468_v20 = vrot.slane %v454_v11, %v1377_v13  ;;  %v1388_v21 = vrot.slane %v263_v6, %v1377_v13  ;;  %v1391_v22 = vrot.slane %v503_v12, %v1377_v13 }
  0x79   : > { %v281_v23 = vcombine.high %v273_v15, %v273_v15  ;;  %v289_v24 = vrot.slane %v273_v15, %v1377_v13  ;;  %v282_v25 = vcombine.high %v280_v16, %v280_v16  ;;  %v296_v26 = vrot.slane %v280_v16, %v1377_v13 }
  0x7a   : > { %v330_v27 = vcombine.high %v322_v17, %v322_v17  ;;  %v338_v28 = vrot.slane %v322_v17, %v1377_v13  ;;  %v331_v29 = vcombine.high %v329_v18, %v329_v18  ;;  %v345_v30 = vrot.slane %v329_v18, %v1377_v13 }
  0x7b   : > { %v303_v31 = vrot.slane %v281_v23, %v1377_v13  ;;  %v367_v32 = vrot.slane %v289_v24, %v1379_v14  ;;  %v311_v33 = vcombine.high %v289_v24, %v289_v24  ;;  %v310_v34 = vrot.slane %v282_v25, %v1377_v13 }
  0x7c   : > { %v383_v35 = vrot.slane %v296_v26, %v1379_v14  ;;  %v312_v36 = vcombine.high %v296_v26, %v296_v26  ;;  %v352_v37 = vrot.slane %v330_v27, %v1377_v13  ;;  %v399_v38 = vrot.slane %v338_v28, %v1379_v14 }
  0x7d   : > { %v371_v39 = vrot.slane %v303_v31, %v1379_v14  ;;  %v313_v40 = vcombine.high %v303_v31, %v303_v31  ;;  %v375_v41 = vrot.slane %v311_v33, %v1379_v14  ;;  %v387_v42 = vrot.slane %v310_v34, %v1379_v14 }
  0x7e   : > { %v314_v43 = vcombine.high %v310_v34, %v310_v34  ;;  %v391_v44 = vrot.slane %v312_v36, %v1379_v14  ;;  %v403_v45 = vrot.slane %v352_v37, %v1379_v14  ;;  %v360_v46 = vcombine.high %v338_v28, %v338_v28 }
  0x7f   : > { %v428_v47 = vcombine.low %v367_v32, %v371_v39  ;;  %v379_v48 = vrot.slane %v313_v40, %v1379_v14  ;;  %v430_v49 = vcombine.low %v383_v35, %v387_v42  ;;  %v362_v50 = vcombine.high %v352_v37, %v352_v37 }
  0x80   : > { %v395_v51 = vrot.slane %v314_v43, %v1379_v14  ;;  %v432_v52 = vcombine.low %v399_v38, %v403_v45  ;;  %v407_v53 = vrot.slane %v360_v46, %v1379_v14  ;;  %v359_v54 = vrot.slane %v331_v29, %v1377_v13 }
  0x81   : > { %444 = vst [vmem:[#allocation2] sm:$0xff] %v428_v47  ;;  %v429_v55 = vcombine.low %v375_v41, %v379_v48  ;;  %446 = vst [vmem:[#allocation2 + $0x10] sm:$0xff] %v430_v49  ;;  %v411_v56 = vrot.slane %v362_v50, %v1379_v14  ;;  %v415_v57 = vrot.slane %v345_v30, %v1379_v14 }
  0x82   : > { %v361_v58 = vcombine.high %v345_v30, %v345_v30  ;;  %v431_v59 = vcombine.low %v391_v44, %v395_v51  ;;  %448 = vst [vmem:[#allocation2 + $0x20] sm:$0xff] %v432_v52  ;;  %v419_v60 = vrot.slane %v359_v54, %v1379_v14  ;;  %v363_v61 = vcombine.high %v359_v54, %v359_v54 }
  0x83   : > { %v469_v62 = vcombine.high %v461_v19, %v461_v19  ;;  %445 = vst [vmem:[#allocation2 + $0x8] sm:$0xff] %v429_v55  ;;  %v433_v63 = vcombine.low %v407_v53, %v411_v56  ;;  %v477_v1 = vrot.slane %v461_v19, %v1377_v13  ;;  %v470_v2 = vcombine.high %v468_v20, %v468_v20 }
  0x84   : > { %v423_v0 = vrot.slane %v361_v58, %v1379_v14  ;;  %447 = vst [vmem:[#allocation2 + $0x18] sm:$0xff] %v431_v59  ;;  %v434_v3 = vcombine.low %v415_v57, %v419_v60  ;;  %v427_v4 = vrot.slane %v363_v61, %v1379_v14  ;;  %v484_v6 = vrot.slane %v468_v20, %v1377_v13 }
  0x85   : > { %v491_v5 = vrot.slane %v469_v62, %v1377_v13  ;;  %449 = vst [vmem:[#allocation2 + $0x28] sm:$0xff] %v433_v63  ;;  %v555_v7 = vrot.slane %v477_v1, %v1379_v14  ;;  %v499_v8 = vcombine.high %v477_v1, %v477_v1  ;;  %v498_v9 = vrot.slane %v470_v2, %v1377_v13 }
  0x86   : > { %v518_v10 = vcombine.high %v1388_v21, %v1388_v21  ;;  %450 = vst [vmem:[#allocation2 + $0x30] sm:$0xff] %v434_v3  ;;  %v435_v11 = vcombine.low %v423_v0, %v427_v4  ;;  %v571_v16 = vrot.slane %v484_v6, %v1379_v14  ;;  %v500_v19 = vcombine.high %v484_v6, %v484_v6 }
  0x87   : > { %v559_v12 = vrot.slane %v491_v5, %v1379_v14  ;;  %v501_v15 = vcombine.high %v491_v5, %v491_v5  ;;  %v563_v17 = vrot.slane %v499_v8, %v1379_v14  ;;  %v575_v18 = vrot.slane %v498_v9, %v1379_v14 }
  0x88   : > { %v502_v20 = vcombine.high %v498_v9, %v498_v9  ;;  %451 = vst [vmem:[#allocation2 + $0x38] sm:$0xff] %v435_v11  ;;  %v526_v25 = vrot.slane %v1388_v21, %v1377_v13  ;;  %v540_v26 = vrot.slane %v518_v10, %v1377_v13  ;;  %v579_v28 = vrot.slane %v500_v19, %v1379_v14 }
  0x89   : > { %v616_v23 = vcombine.low %v555_v7, %v559_v12  ;;  %v567_v24 = vrot.slane %v501_v15, %v1379_v14  ;;  %v618_v27 = vcombine.low %v571_v16, %v575_v18  ;;  %v519_v30 = vcombine.high %v1391_v22, %v1391_v22 }
  0x8a   : > { %v583_v29 = vrot.slane %v502_v20, %v1379_v14  ;;  %v587_v32 = vrot.slane %v526_v25, %v1379_v14  ;;  %v591_v33 = vrot.slane %v540_v26, %v1379_v14  ;;  %v548_v34 = vcombine.high %v526_v25, %v526_v25 }
  0x8b   : > { %632 = vst [vmem:[#allocation3] sm:$0xff] %v616_v23  ;;  %v617_v31 = vcombine.low %v563_v17, %v567_v24  ;;  %634 = vst [vmem:[#allocation3 + $0x10] sm:$0xff] %v618_v27  ;;  %v550_v21 = vcombine.high %v540_v26, %v540_v26  ;;  %v533_v36 = vrot.slane %v1391_v22, %v1377_v13 }
  0x8c   : > { %v619_v35 = vcombine.low %v579_v28, %v583_v29  ;;  %v547_v37 = vrot.slane %v519_v30, %v1377_v13  ;;  %v620_v38 = vcombine.low %v587_v32, %v591_v33  ;;  %v595_v39 = vrot.slane %v548_v34, %v1379_v14 }
  0x8d   : > { %633 = vst [vmem:[#allocation3 + $0x8] sm:$0xff] %v617_v31  ;;  %v599_v40 = vrot.slane %v550_v21, %v1379_v14  ;;  %v603_v41 = vrot.slane %v533_v36, %v1379_v14  ;;  %v549_v43 = vcombine.high %v533_v36, %v533_v36 }
  0x8e   : > { %635 = vst [vmem:[#allocation3 + $0x18] sm:$0xff] %v619_v35  ;;  %v607_v42 = vrot.slane %v547_v37, %v1379_v14  ;;  %636 = vst [vmem:[#allocation3 + $0x20] sm:$0xff] %v620_v38  ;;  %v551_v44 = vcombine.high %v547_v37, %v547_v37 }
  0x8f   : > { %v621_v45 = vcombine.low %v595_v39, %v599_v40  ;;  %v611_v22 = vrot.slane %v549_v43, %v1379_v14 }
  0x90   : > { %v622_v46 = vcombine.low %v603_v41, %v607_v42  ;;  %v615_v13 = vrot.slane %v551_v44, %v1379_v14 }
  0x91   : > { %637 = vst [vmem:[#allocation3 + $0x28] sm:$0xff] %v621_v45 }
  0x92   : > { %638 = vst [vmem:[#allocation3 + $0x30] sm:$0xff] %v622_v46  ;;  %v623_v47 = vcombine.low %v611_v22, %v615_v13 }
  0x94   : > { %639 = vst [vmem:[#allocation3 + $0x38] sm:$0xff] %v623_v47 }
  0x95 PF: > { %v642_v48 = vld [vmem:[%s1364_s19 + $0x10] sm:$0xff]  ;;  %v640_v49 = vld [vmem:[%s1364_s19] sm:$0xff]  ;;  %s1133_s20 = smov 64   ;;  %v643_v50 = vld [vmem:[%s1364_s19 + $0x18] sm:$0xff]  ;;  %s859_s22 = sshll.u32 %s1117_s15, 10 }
  0x96   : > { %652 = vrot.lane.b32.xlu1 %v642_v48, %s1133_s20  ;;  %648 = vrot.lane.b32.xlu0 %v640_v49, %s1133_s20  ;;  %v641_v14 = vld [vmem:[%s1364_s19 + $0x8] sm:$0xff]  ;;  %v644_v52 = vld [vmem:[%s1364_s19 + $0x20] sm:$0xff]  ;;  %v666_v55 = vld [vmem:[#allocation2 + $0x10] sm:$0xff]  ;;  %s728_s25 = sshll.u32 %s1374_s24, 4  ;;  %s1466_s26 = scalar_lea.hbm %s1522_s3, %s859_s22  ;;  %s1468_s25 = int_to_ptr.vmem [resolvable:$true] %s728_s25 }
  0x97   : > { %v645_v51 = vld [vmem:[%s1364_s19 + $0x28] sm:$0xff]  ;;  %v647_v53 = vld [vmem:[%s1364_s19 + $0x38] sm:$0xff]  ;;  %v646_v54 = vld [vmem:[%s1364_s19 + $0x30] sm:$0xff]  ;;  %v674_v59 = vmul.f32 %v666_v55, %v642_v48  ;;  %s713_s15 = scalar_lea.sflag [#allocation6], %s1360_s6  ;;  %s1039_s4 = scalar_lea.vmem %s1468_s25, 1024 }
  0x98   : > { %v664_v56 = vld [vmem:[#allocation2] sm:$0xff]  ;;  %v682_v57 = vld [vmem:[#allocation3 + $0x10] sm:$0xff]  ;;  %v667_v61 = vld [vmem:[#allocation2 + $0x18] sm:$0xff]  ;;  %p1040_p8 = scmp.ne.s32.totalorder %s1468_s25, %s1039_s4  ;;  %s1134_s5 = smov [#allocation10]  }
  0x99   : > { %v680_v58 = vld [vmem:[#allocation3] sm:$0xff]  ;;  %v672_v60 = vmul.f32 %v664_v56, %v640_v49  ;;  %v665_v62 = vld [vmem:[#allocation2 + $0x8] sm:$0xff]  ;;  %v683_v3 = vld [vmem:[#allocation3 + $0x18] sm:$0xff]  ;;  %v675_v5 = vmul.f32 %v667_v61, %v643_v50  ;;  %s1043_s9 = sshll.u32 %s1134_s5, 4  ;;  %s1044_s9 = int_to_ptr.vmem [resolvable:$false] %s1043_s9 }
  0x9a   : > { %654 = vrot.lane.b32.xlu1 %v643_v50, %s1133_s20  ;;  %650 = vrot.lane.b32.xlu0 %v641_v14, %s1133_s20  ;;  %v681_v4 = vld [vmem:[#allocation3 + $0x8] sm:$0xff]  ;;  %v673_v6 = vmul.f32 %v665_v62, %v641_v14  ;;  %v668_v10 = vld [vmem:[#allocation2 + $0x20] sm:$0xff]  ;;  %v671_v25 = vld [vmem:[#allocation2 + $0x38] sm:$0xff]  ;;  %p1041_p10 = pnand %p1040_p8, %p1302_p5  ;;  %s1045_s21 = scalar_lea.vmem %s1044_s9, 2048 }
  0x9b   : > { %v669_v9 = vld [vmem:[#allocation2 + $0x28] sm:$0xff]  ;;  %v684_v18 = vld [vmem:[#allocation3 + $0x20] sm:$0xff]  ;;  %v676_v20 = vmul.f32 %v668_v10, %v644_v52  ;;  %v670_v26 = vld [vmem:[#allocation2 + $0x30] sm:$0xff]  ;;  %v679_v33 = vmul.f32 %v671_v25, %v647_v53  ;;  %p1046_p7 = scmp.lt.s32.totalorder %s1468_s25, %s1044_s9  ;;  %p1047_p9 = scmp.lt.s32.totalorder %s1045_s21, %s1039_s4 }
  0x9c   : > { %v685_v17 = vld [vmem:[#allocation3 + $0x28] sm:$0xff]  ;;  %v677_v19 = vmul.f32 %v669_v9, %v645_v51  ;;  %v687_v31 = vld [vmem:[#allocation3 + $0x38] sm:$0xff]  ;;  %v686_v32 = vld [vmem:[#allocation3 + $0x30] sm:$0xff]  ;;  %v678_v34 = vmul.f32 %v670_v26, %v646_v54  ;;  %p1042_p3 = pneg %p1041_p10 }
  0x9d   : > { %p1048_p0 = por %p1047_p9, %p1046_p7 }
  0x9e   : > { %658 = vrot.lane.b32.xlu1 %v645_v51, %s1133_s20  ;;  %656 = vrot.lane.b32.xlu0 %v644_v52, %s1133_s20 }
  0x9f   : > { %p1049_p2 = pnand %p1048_p0, %p1042_p3 }
  0xa2   : > { %662 = vrot.lane.b32.xlu1 %v647_v53, %s1133_s20  ;;  %660 = vrot.lane.b32.xlu0 %v646_v54, %s1133_s20 }
 0x108   : > { %v653_v63 = vpop.permute.xlu1 %652  ;;  %v649_v0 = vpop.permute.xlu0 %648 }
 0x109   : > { %v690_v1 = vmul.f32 %v682_v57, %v653_v63  ;;  %v688_v2 = vmul.f32 %v680_v58, %v649_v0 }
 0x10b   : > { %v698_v7 = vadd.f32 %v690_v1, %v674_v59  ;;  %v696_v8 = vadd.f32 %v688_v2, %v672_v60 }
 0x10c   : > { %v655_v11 = vpop.permute.xlu1 %654  ;;  %v651_v12 = vpop.permute.xlu0 %650 }
 0x10d   : > { %706 = vst [vmem:[%s1374_s24 + $0x10] sm:$0xff] %v698_v7  ;;  %704 = vst [vmem:[%s1374_s24] sm:$0xff] %v696_v8  ;;  %v691_v15 = vmul.f32 %v683_v3, %v655_v11  ;;  %v689_v16 = vmul.f32 %v681_v4, %v651_v12 }
 0x10f   : > { %v699_v23 = vadd.f32 %v691_v15, %v675_v5  ;;  %v697_v24 = vadd.f32 %v689_v16, %v673_v6 }
 0x110   : > { %v659_v27 = vpop.permute.xlu1 %658  ;;  %v657_v28 = vpop.permute.xlu0 %656 }
 0x111   : > { %707 = vst [vmem:[%s1374_s24 + $0x18] sm:$0xff] %v699_v23  ;;  %705 = vst [vmem:[%s1374_s24 + $0x8] sm:$0xff] %v697_v24  ;;  %v693_v29 = vmul.f32 %v685_v17, %v659_v27  ;;  %v692_v30 = vmul.f32 %v684_v18, %v657_v28 }
 0x113   : > { %v701_v35 = vadd.f32 %v693_v29, %v677_v19  ;;  %v700_v21 = vadd.f32 %v692_v30, %v676_v20 }
 0x114   : > { %v663_v36 = vpop.permute.xlu1 %662  ;;  %v661_v37 = vpop.permute.xlu0 %660 }
 0x115   : > { %709 = vst [vmem:[%s1374_s24 + $0x28] sm:$0xff] %v701_v35  ;;  %708 = vst [vmem:[%s1374_s24 + $0x20] sm:$0xff] %v700_v21  ;;  %v695_v38 = vmul.f32 %v687_v31, %v663_v36  ;;  %v694_v39 = vmul.f32 %v686_v32, %v661_v37 }
 0x117   : > { %v703_v40 = vadd.f32 %v695_v38, %v679_v33  ;;  %v702_v41 = vadd.f32 %v694_v39, %v678_v34 }
 0x119   : > { %711 = vst [vmem:[%s1374_s24 + $0x38] sm:$0xff] %v703_v40  ;;  %710 = vst [vmem:[%s1374_s24 + $0x30] sm:$0xff] %v702_v41 }
 0x11a   : > { %1052 = shalt.err (!%p1049_p2)
}
 0x11b   : > { %s1053_s8 = scalar_lea.hbm %s1466_s26, 1024  ;;  %s1057_s18 = scalar_lea.hbm %s1522_s3, 2048 }
 0x11c   : > { %p1054_p13 = scmp.ne.s32.totalorder %s1466_s26, %s1053_s8  ;;  %p1058_p1 = scmp.lt.u32.totalorder %s1466_s26, %s1522_s3 }
 0x11d   : > { %p1059_p11 = scmp.lt.u32.totalorder %s1057_s18, %s1053_s8  ;;  %p1061_p8 = scmp.lt.u32.totalorder %s1053_s8, %s1466_s26 }
 0x11e   : > { %p1055_p4 = pnand %p1054_p13, %p1302_p5 }
 0x11f   : > { %p1060_p6 = por %p1059_p11, %p1058_p1 }
 0x120   : > { %p1056_p12 = pneg %p1055_p4 }
 0x121   : > { %p1062_p10 = por %p1061_p8, %p1060_p6 }
 0x123   : > { %p1063_p3 = pnand %p1062_p10, %p1056_p12 }
 0x125   : > { %1066 = shalt.err (!%p1063_p3)
}
 0x126   : > { %s1135_s20 = smov 128   ;;  %s1136_s22 = smov 8  }
 0x127   : > { %870 = dma.vmem_to_hbm [thread:$0]  (%p1302_p5), %s1468_s25, 1024, %s1466_s26, %s713_s15, %s1135_s20, %s1135_s20, %s1136_s22  }
 0x128 PF: > { %s743_s28 = sand.u32 1, %s1105_s12   ;;  %p1539_p7 = scmp.ne.s32.totalorder %s1530_s23, 0 }
 0x129   : > { %p1540_p9 = scmp.ge.s32.totalorder %s1125_s17, 2  ;;  %s744_s30 = scalar_lea.sflag [#allocation6], %s743_s28 }
 0x12b   : > { %p884_p0 = pnand %p1540_p9, %p1539_p7 }
 0x12d   : > { %1100 = dma.done.wait (!%p884_p0), %s744_s30, 1024  }
 0x12e   : > { %1102 = vsyncadd (!%p884_p0), %s744_s30, 4294966272  ;;  %s20_s17 = sadd.s32 1, %s1125_s17   ;;  %s1541_s12 = smov %s1109_s13 }
 0x12f   : > { %p17_p2 = scmp.ge.s32.totalorder %s20_s17, 4   ;;  %s1542_s13 = smov %s1113_s14 }
 0x130   : > { %s1543_s14 = smov %s1311_s11  ;;  %s1544_s15 = smov %s1121_s16 }
 0x131   : > { %s1545_s16 = smov %s1547_s27  ;;  %19 = sbr.rel (!%p17_p2) target bundleno = 7 (0x7), region = 91 }
 0x138   :  { %749 = vsyncpa [#allocation5], 1 }
 0x139   :  { %751 = vsyncpa [#allocation5 + $0x1], 1 }
 0x13a   :  { %752 = vsyncpa [#allocation8], 1 }
 0x13b   :  { %753 = vsyncpa [#allocation6], 1 }
 0x13c   :  { %755 = vsyncpa [#allocation6 + $0x1], 1 }

</bundles_post_ra>
